<compile_context>
chip_gen: v5e
topology: v5e:2x2
jax: 0.10.0
libtpu: 0.0.40
codegen_flags: <defaults>
</compile_context>

<pallas_src>
import jax
import jax.numpy as jnp
from jax.experimental import pallas as pl
from jax.experimental.pallas import tpu as pltpu


# ---- tiling constants -------------------------------------------------------
_MAX_TN = 1024                        # lane columns per tile (multiple of 128)
_TILE_TARGET_BYTES = 4 * 1024 * 1024  # ~4 MiB of p1 per tile (any dtype)
_SMALL_BYTES = 2 * 1024 * 1024        # <= 2 MiB per array -> single-block path


def _round_up(x, m):
    return ((x + m - 1) // m) * m


def _pick_tm(tn, itemsize, rows):
    """Rows per tile: ~4 MiB of p1 per tile, multiple of 8, not >> rows."""
    tm = max(8, (_TILE_TARGET_BYTES // (tn * itemsize)) // 8 * 8)
    tm = min(tm, 4096)
    tm = min(tm, max(8, _round_up(rows, 8)))
    return tm


# ---- kernels ----------------------------------------------------------------
def _xrho1_dense_kernel(inv_c_ref, p1_ref, mu1_ref, o_ref):
    # inv_c = 1/c, computed once in the wrapper, read from SMEM.
    p = p1_ref[...]
    inv_c = inv_c_ref[0].astype(p.dtype)      # keep math in the input dtype
    o_ref[...] = (p - inv_c * mu1_ref[...]).astype(o_ref.dtype)


def _xrho1_scalar_mu_kernel(shift_ref, p1_ref, o_ref):
    # shift = (1/c) * mu1  (mu1 is a scalar): only two HBM streams.
    p = p1_ref[...]
    o_ref[...] = (p - shift_ref[0].astype(p.dtype)).astype(o_ref.dtype)


# ---- wrapper ----------------------------------------------------------------
def xrho1_layer(p1, mu1, c):
    """rho1 = p1 - (1/c) * mu1   (elementwise; c is a scalar)."""
    p1 = jnp.asarray(p1)
    mu1 = jnp.asarray(mu1)
    out_dtype = jnp.result_type(p1.dtype, mu1.dtype)
    p1 = p1.astype(out_dtype)

    # torch.div(1, c): compute once, pass via SMEM.
    inv_c = (1.0 / jnp.asarray(c, jnp.float32)).reshape((1,))

    mu_is_scalar = (mu1.size == 1)
    orig_shape = p1.shape
    itemsize = jnp.dtype(out_dtype).itemsize
    nbytes = p1.size * itemsize

    # ---- small path: documented (1,1) case (and anything tiny) -------------
    if nbytes <= _SMALL_BYTES:
        mu_full = jnp.broadcast_to(mu1.astype(out_dtype), p1.shape)
        p2d = p1 if p1.ndim >= 2 else p1.reshape(1, -1)
        m2d = mu_full.reshape(p2d.shape)
        nd = p2d.ndim
        out = pl.pallas_call(
            _xrho1_dense_kernel,
            out_shape=jax.ShapeDtypeStruct(p2d.shape, out_dtype),
            in_specs=[
                pl.BlockSpec(memory_space=pltpu.SMEM),               # inv_c
                pl.BlockSpec(p2d.shape, lambda *_: (0,) * nd),       # p1
                pl.BlockSpec(p2d.shape, lambda *_: (0,) * nd),       # mu1
            ],
            out_specs=pl.BlockSpec(p2d.shape, lambda *_: (0,) * nd),
        )(inv_c, p2d, m2d)
        return out.reshape(orig_shape)

    # ---- large path ----------------------------------------------------------
    pad_to = None  # original element count, if we had to pad the fallback path

    if p1.ndim >= 2 and (p1.shape[-1] % 128) == 0:
        # In-place tiling: collapse leading dims (free reshape), tile 2-D grid,
        # let Pallas mask the ragged edge blocks. Zero wrapper copies.
        cols = p1.shape[-1]
        rows = p1.size // cols
        p2d = p1.reshape(rows, cols)
        tn = cols if cols <= _MAX_TN else _MAX_TN
        tm = _pick_tm(tn, itemsize, rows)
        grid = (pl.cdiv(rows, tm), pl.cdiv(cols, tn))
        tile_spec = pl.BlockSpec((tm, tn), lambda i, j: (i, j))
        semantics = ("parallel", "parallel")
        if not mu_is_scalar:
            mu_full = mu1.astype(out_dtype)
            if mu_full.shape != orig_shape:
                # TODO(synk): row/column-broadcast mu1 could be streamed compact
                # with its own BlockSpec; materialize only in this rare case.
                mu_full = jnp.broadcast_to(mu_full, orig_shape)
            m2d = mu_full.reshape(rows, cols)
    else:
        # Fallback for awkward shapes: flatten, pad only to a multiple of 1024
        # elements, 1-D grid with ragged last row-block handled by cdiv.
        n = p1.size
        tn = _MAX_TN
        n_pad = pl.cdiv(n, tn) * tn
        flat_p = p1.reshape(-1)
        if not mu_is_scalar:
            mu_full = jnp.broadcast_to(mu1.astype(out_dtype), orig_shape)
            flat_m = mu_full.reshape(-1)
        if n_pad != n:
            flat_p = jnp.pad(flat_p, (0, n_pad - n))
            if not mu_is_scalar:
                flat_m = jnp.pad(flat_m, (0, n_pad - n))
            pad_to = n
        rows = n_pad // tn
        p2d = flat_p.reshape(rows, tn)
        if not mu_is_scalar:
            m2d = flat_m.reshape(rows, tn)
        tm = _pick_tm(tn, itemsize, rows)
        grid = (pl.cdiv(rows, tm),)
        tile_spec = pl.BlockSpec((tm, tn), lambda i: (i, 0))
        semantics = ("parallel",)

    cparams = pltpu.CompilerParams(
        dimension_semantics=semantics,       # shard across v7x's 2 TensorCores
        vmem_limit_bytes=48 * 1024 * 1024,   # <= 24 MiB of buffers + headroom
    )

    if mu_is_scalar:
        # Fold mu1 into an SMEM scalar: shift = (1/c) * mu1 -> 2 HBM streams.
        shift = (inv_c[0] * mu1.reshape(()).astype(jnp.float32)).reshape((1,))
        out2d = pl.pallas_call(
            _xrho1_scalar_mu_kernel,
            out_shape=jax.ShapeDtypeStruct(p2d.shape, out_dtype),
            grid=grid,
            in_specs=[pl.BlockSpec(memory_space=pltpu.SMEM), tile_spec],
            out_specs=tile_spec,
            compiler_params=cparams,
        )(shift, p2d)
    else:
        out2d = pl.pallas_call(
            _xrho1_dense_kernel,
            out_shape=jax.ShapeDtypeStruct(p2d.shape, out_dtype),
            grid=grid,
            in_specs=[pl.BlockSpec(memory_space=pltpu.SMEM), tile_spec, tile_spec],
            out_specs=tile_spec,
            compiler_params=cparams,
        )(inv_c, p2d, m2d)

    if pad_to is not None:
        return out2d.reshape(-1)[:pad_to].reshape(orig_shape)
    return out2d.reshape(orig_shape)


if __name__ == "__main__":
    key = jax.random.PRNGKey(0)
    k1, k2, k3, k4, k5, k6 = jax.random.split(key, 6)
    c = jnp.float32(2.5)
    inv_c = 1.0 / c

    # Documented module shapes: p, mu are (1, 1).
    p1 = jax.random.normal(k1, (1, 1), dtype=jnp.float32)
    mu1 = jax.random.normal(k2, (1, 1), dtype=jnp.float32)
    out = xrho1_layer(p1, mu1, c)
    jax.block_until_ready(out)
    ref = p1 - inv_c * mu1
    assert out.shape == ref.shape and out.dtype == ref.dtype
    assert jnp.allclose(out, ref, atol=1e-6, rtol=1e-6), (out, ref)

    # In-place tiled path, exact tiles (no wrapper copies).
    p_a = jax.random.normal(k3, (1024, 1024), dtype=jnp.float32)
    mu_a = jax.random.normal(k4, (1024, 1024), dtype=jnp.float32)
    out_a = xrho1_layer(p_a, mu_a, c)
    jax.block_until_ready(out_a)
    assert jnp.allclose(out_a, p_a - inv_c * mu_a, atol=1e-5, rtol=1e-5)

    # In-place tiled path, ragged rows + narrow lane-aligned columns.
    p_b = jax.random.normal(k5, (1000, 640), dtype=jnp.float32)
    mu_b = jax.random.normal(k6, (1000, 640), dtype=jnp.float32)
    out_b = xrho1_layer(p_b, mu_b, c)
    jax.block_until_ready(out_b)
    assert jnp.allclose(out_b, p_b - inv_c * mu_b, atol=1e-5, rtol=1e-5)

    # Scalar mu1 (broadcast) -> 2-stream kernel with SMEM shift.
    mu_s = jnp.float32(0.75)
    out_c = xrho1_layer(p_a, mu_s, c)
    jax.block_until_ready(out_c)
    assert jnp.allclose(out_c, p_a - inv_c * mu_s, atol=1e-5, rtol=1e-5)

    # Flatten fallback (last dim not a multiple of 128), minimal padding.
    p_d = jax.random.normal(k3, (3000, 300), dtype=jnp.float32)
    mu_d = jax.random.normal(k4, (3000, 300), dtype=jnp.float32)
    out_d = xrho1_layer(p_d, mu_d, c)
    jax.block_until_ready(out_d)
    assert jnp.allclose(out_d, p_d - inv_c * mu_d, atol=1e-5, rtol=1e-5)

    print("KERNEL_OK")
</pallas_src>

<mosaic_0001>
module attributes {stable_mosaic.version = 11 : i64} {
  func.func @_xrho1_dense_kernel(%arg0: memref<1xf32, #tpu.memory_space<smem>>, %arg1: memref<1x1xf32, #tpu.memory_space<vmem>>, %arg2: memref<1x1xf32, #tpu.memory_space<vmem>>, %arg3: memref<1x1xf32, #tpu.memory_space<vmem>>) attributes {dimension_semantics = [], scalar_prefetch = 0 : i64, scratch_operands = 0 : i64, tpu.core_type = #tpu.core_type<tc>} {
    %c0 = arith.constant 0 : index
    %c0_0 = arith.constant 0 : index
    %0 = vector.load %arg1[%c0, %c0_0] : memref<1x1xf32, #tpu.memory_space<vmem>>, vector<1x1xf32>
    %c0_1 = arith.constant 0 : index
    %1 = memref.load %arg0[%c0_1] : memref<1xf32, #tpu.memory_space<smem>>
    %c0_2 = arith.constant 0 : index
    %c0_3 = arith.constant 0 : index
    %2 = vector.load %arg2[%c0_2, %c0_3] : memref<1x1xf32, #tpu.memory_space<vmem>>, vector<1x1xf32>
    %3 = vector.broadcast %1 : f32 to vector<1x1xf32>
    %4 = arith.mulf %3, %2 : vector<1x1xf32>
    %5 = arith.subf %0, %4 : vector<1x1xf32>
    %c0_4 = arith.constant 0 : index
    %c0_5 = arith.constant 0 : index
    %6 = vector.load %arg3[%c0_4, %c0_5] : memref<1x1xf32, #tpu.memory_space<vmem>>, vector<1x1xf32>
    tpu.vector_store %arg3[%c0_4, %c0_5], %5 {strides = array<i32>} : memref<1x1xf32, #tpu.memory_space<vmem>>, vector<1x1xf32>,
    return
  }
}

</mosaic_0001>

<bundles_post_ra>
// kernel: tpu_custom_call.1
= control target key start
LH: loop header
LB: loop body
LE: loop exit
PB: predicated region body
PF: predicated region fallthrough
CT: control target
= control target key end

     0   :  { %s104_s0 = inlined_call_operand.<no memory space> [shape: f32[1], index: 0, kind: input, shape index: {}]   ;;  %s105_s1 = inlined_call_operand.<no memory space> [shape: f32[1,1], index: 1, kind: input, shape index: {}]   ;;  %s106_s3 = inlined_call_operand.hbm [shape: f32[1,1], index: 3, kind: output, shape index: {}]   ;;  %s107_s2 = inlined_call_operand.<no memory space> [shape: f32[1,1], index: 2, kind: input, shape index: {}]  }
   0x1   :  { %v9_v0 = vstv %s105_s1  ;;  %v11_v1 = vstv %s107_s2 }
   0x2   :  { %10 = vst [vmem:[#allocation3] sm:$0x1] %v9_v0 }
   0x3   :  { %12 = vst [vmem:[#allocation4] sm:$0x1] %v11_v1 }
   0x4   :  { %v23_v4 = vstv %s104_s0 }
   0x9   :  { %v20_v2 = vld [vmem:[#allocation3] sm:$0x1] }
   0xa   :  { %v22_v3 = vld [vmem:[#allocation4] sm:$0x1] }
   0xb   :  { %v24_v5 = vmul.f32 %v23_v4, %v22_v3 }
   0xc   :  { %13 = vsyncpa [#allocation6], 0  ;;  %s71_s18 = smov [#allocation5]   ;;  %s35_s1 = sshll.u32 %s106_s3, 4  ;;  %vm26_vm0 = vcmask 0   ;;  %s36_s1 = int_to_ptr.hbm [resolvable:$true] %s35_s1 }
   0xd   :  { %s33_s19 = sshll.u32 %s71_s18, 4  ;;  %v25_v6 = vsub.f32 %v20_v2, %v24_v5  ;;  %s34_s19 = int_to_ptr.vmem [resolvable:$true] %s33_s19 }
   0xf   :  { %27 = vst.msk [vmem:[#allocation5] sm:$0x1] %vm26_vm0, %v25_v6 }
  0x10   :  { %38 = dma.vmem_to_hbm [thread:$0]  %s34_s19, 16, %s36_s1, [#allocation6]  }
  0x11   :  { %69 = dma.done.wait [#allocation6], 16  }
  0x12   :  { %70 = vsyncadd [#allocation6], 4294967280 }
  0x13   :  { %43 = vsyncpa [#allocation6], 1 }

</bundles_post_ra>
